<compile_context>
chip_gen: v7x
topology: tpu7x:2x2x1
jax: 0.10.0
libtpu: 0.0.40
codegen_flags: <defaults>
</compile_context>

<pallas_src>
import jax
import jax.numpy as jnp
from jax.experimental import pallas as pl
from jax.experimental.pallas import tpu as pltpu


def mha_kernel(vt_ref, wvt_ref, bv_ref, wo_ref, out_ref):
    # V^T = (v @ wv + bv)^T, computed directly in (hidden, B) layout:
    #   Vt[h, b] = sum_k wv[k, h] * v[b, k] + bv[h]
    vt = jnp.dot(wvt_ref[...], vt_ref[...],
                 preferred_element_type=jnp.float32) + bv_ref[...]        # (hidden, B)

    # seq_len == 1: softmax over the key axis == 1.0 exactly, so context == V.
    # TODO(synk): att_dropout is nn.Dropout — identity at inference, no RNG applied here.

    # Output head (hidden -> 1) as VPU multiply + sublane reduce instead of a
    # one-column MXU matmul.  Output bias bo omitted (softmax shift invariance).
    logits = jnp.sum(vt * wo_ref[...], axis=0, keepdims=True)             # (1, B)

    # Final torch.softmax over dim=0 (the batch axis) — lane-direction reductions.
    m = jnp.max(logits, axis=1, keepdims=True)
    e = jnp.exp(logits - m)
    out_ref[...] = e / jnp.sum(e, axis=1, keepdims=True)                  # (1, B)


def multi_head_attention(q, k, v, params, num_heads):
    # num_heads is kept for API parity; with seq_len == 1 the per-head split cannot
    # change the result (attention weights are identically 1 for every head).
    del q, k, num_heads
    B, hidden = v.shape
    wq, bq, wk, bk, wv, bv, wo, bo = params
    del wq, bq, wk, bk, bo   # dead under seq_len==1 / softmax shift invariance

    # Host-side layout plumbing (tiny XLA ops): transposed operands for a lane-dense
    # (1, B) kernel output.
    vT = v.T                              # (hidden, B)
    wvT = wv.T                            # (hidden, hidden)
    bv_col = bv.reshape(hidden, 1)        # (hidden, 1), broadcast over batch lanes
    wo_col = wo.reshape(hidden, 1)        # (hidden, 1)

    inputs = (vT, wvT, bv_col, wo_col)

    def full_spec(arr):
        return pl.BlockSpec(arr.shape, lambda i: (0, 0))

    # Single grid step: at B=8 the whole problem is a handful of vregs.  If B were
    # scaled up, tile the batch over a "parallel" grid axis (megacore on v7x) and turn
    # the batch softmax into a two-pass max/sum with pl.when init/finalize.
    out = pl.pallas_call(
        mha_kernel,
        out_shape=jax.ShapeDtypeStruct((1, B), jnp.float32),
        grid=(1,),
        in_specs=[full_spec(a) for a in inputs],
        out_specs=pl.BlockSpec((1, B), lambda i: (0, 0)),
        compiler_params=pltpu.CompilerParams(
            dimension_semantics=("arbitrary",)),
    )(*inputs)
    return out.reshape(B)


def ref_forward(q, k, v, params, num_heads):
    """Pure-JAX transcription of the full PyTorch forward (seq_len = 1)."""
    wq, bq, wk, bk, wv, bv, wo, bo = params
    B, hidden = q.shape
    dk = hidden // num_heads
    scale = dk ** (-0.5)

    Q = (q @ wq + bq).reshape(B, 1, num_heads, dk).transpose(0, 2, 1, 3)   # (B,h,1,dk)
    K = (k @ wk + bk).reshape(B, 1, num_heads, dk).transpose(0, 2, 3, 1)   # (B,h,dk,1)
    V = (v @ wv + bv).reshape(B, 1, num_heads, dk).transpose(0, 2, 1, 3)   # (B,h,1,dk)

    x = jnp.matmul(Q * scale, K)                                           # (B,h,1,1)
    x = jax.nn.softmax(x, axis=3)
    x = jnp.matmul(x, V)                                                   # (B,h,1,dk)
    x = x.transpose(0, 2, 1, 3).reshape(B, 1, num_heads * dk)
    x = (x @ wo + bo).reshape(B)
    return jax.nn.softmax(x, axis=0)


def init_linear(key, fan_in, fan_out):
    """Deterministic nn.Linear-style init: U(-1/sqrt(fan_in), 1/sqrt(fan_in))."""
    kw, kb = jax.random.split(key)
    bound = 1.0 / (fan_in ** 0.5)
    w = jax.random.uniform(kw, (fan_in, fan_out), jnp.float32, -bound, bound)
    b = jax.random.uniform(kb, (fan_out,), jnp.float32, -bound, bound)
    return w, b


if __name__ == "__main__":
    key = jax.random.PRNGKey(0)
    batch, hidden, num_heads = 8, 32, 4   # att_size = 8

    keys = jax.random.split(key, 8)
    wq, bq = init_linear(keys[0], hidden, hidden)
    wk, bk = init_linear(keys[1], hidden, hidden)
    wv, bv = init_linear(keys[2], hidden, hidden)
    wo, bo = init_linear(keys[3], hidden, 1)
    params = (wq, bq, wk, bk, wv, bv, wo, bo)

    q = jax.random.normal(keys[4], (batch, hidden), jnp.float32)
    k = jax.random.normal(keys[5], (batch, hidden), jnp.float32)
    v = jax.random.normal(keys[6], (batch, hidden), jnp.float32)

    out = multi_head_attention(q, k, v, params, num_heads)
    out = jax.block_until_ready(out)

    expected = ref_forward(q, k, v, params, num_heads)
    assert out.shape == (batch,)
    assert jnp.allclose(out, expected, atol=1e-5, rtol=1e-5), (out, expected)
    assert jnp.allclose(jnp.sum(out), 1.0, atol=1e-5)

    print("KERNEL_OK")
</pallas_src>

<mosaic_0001>
module attributes {stable_mosaic.version = 11 : i64} {
  func.func @mha_kernel(%arg0: i32, %arg1: memref<32x8xf32, #tpu.memory_space<vmem>>, %arg2: memref<32x32xf32, #tpu.memory_space<vmem>>, %arg3: memref<32x1xf32, #tpu.memory_space<vmem>>, %arg4: memref<32x1xf32, #tpu.memory_space<vmem>>, %arg5: memref<1x8xf32, #tpu.memory_space<vmem>>) attributes {dimension_semantics = [#tpu.dimension_semantics<arbitrary>], iteration_bounds = array<i64: 1>, scalar_prefetch = 0 : i64, scratch_operands = 0 : i64, tpu.core_type = #tpu.core_type<tc>, window_params = [{pipeline_mode = #tpu.pipeline_mode<synchronous>, transform_indices = @transform_0, window_bounds = array<i64: 32, 8>}, {pipeline_mode = #tpu.pipeline_mode<synchronous>, transform_indices = @transform_1, window_bounds = array<i64: 32, 32>}, {pipeline_mode = #tpu.pipeline_mode<synchronous>, transform_indices = @transform_2, window_bounds = array<i64: 32, 1>}, {pipeline_mode = #tpu.pipeline_mode<synchronous>, transform_indices = @transform_3, window_bounds = array<i64: 32, 1>}, {pipeline_mode = #tpu.pipeline_mode<synchronous>, transform_indices = @transform_4, window_bounds = array<i64: 1, 8>}]} {
    %c0 = arith.constant 0 : index
    %c0_0 = arith.constant 0 : index
    %0 = vector.load %arg2[%c0, %c0_0] : memref<32x32xf32, #tpu.memory_space<vmem>>, vector<32x32xf32>
    %c0_1 = arith.constant 0 : index
    %c0_2 = arith.constant 0 : index
    %1 = vector.load %arg1[%c0_1, %c0_2] : memref<32x8xf32, #tpu.memory_space<vmem>>, vector<32x8xf32>
    %cst = arith.constant dense<0.000000e+00> : vector<32x8xf32>
    %2 = tpu.matmul %0, %1, %cst {dimension_numbers = #tpu.dot_dimension_numbers<[1], [0], [0], [1], [0, 0, 1, 1], [], []>} : vector<32x32xf32>, vector<32x8xf32>, vector<32x8xf32> -> vector<32x8xf32>
    %c0_3 = arith.constant 0 : index
    %c0_4 = arith.constant 0 : index
    %3 = vector.load %arg3[%c0_3, %c0_4] : memref<32x1xf32, #tpu.memory_space<vmem>>, vector<32x1xf32>
    %4 = vector.broadcast %3 : vector<32x1xf32> to vector<32x8xf32>
    %5 = arith.addf %2, %4 : vector<32x8xf32>
    %c0_5 = arith.constant 0 : index
    %c0_6 = arith.constant 0 : index
    %6 = vector.load %arg4[%c0_5, %c0_6] : memref<32x1xf32, #tpu.memory_space<vmem>>, vector<32x1xf32>
    %7 = vector.broadcast %6 : vector<32x1xf32> to vector<32x8xf32>
    %8 = arith.mulf %5, %7 : vector<32x8xf32>
    %cst_7 = arith.constant dense<0.000000e+00> : vector<8xf32>
    %9 = vector.multi_reduction <add>, %8, %cst_7 [0] : vector<32x8xf32> to vector<8xf32>
    %10 = vector.shape_cast %9 : vector<8xf32> to vector<1x8xf32>
    %cst_8 = arith.constant dense<0xFF800000> : vector<1xf32>
    %11 = vector.multi_reduction <maximumf>, %10, %cst_8 [1] : vector<1x8xf32> to vector<1xf32>
    %12 = vector.shape_cast %11 : vector<1xf32> to vector<1x1xf32>
    %13 = vector.broadcast %12 : vector<1x1xf32> to vector<1x8xf32>
    %14 = arith.subf %10, %13 : vector<1x8xf32>
    %15 = math.exp %14 : vector<1x8xf32>
    %cst_9 = arith.constant dense<0.000000e+00> : vector<1xf32>
    %16 = vector.multi_reduction <add>, %15, %cst_9 [1] : vector<1x8xf32> to vector<1xf32>
    %17 = vector.shape_cast %16 : vector<1xf32> to vector<1x1xf32>
    %18 = vector.broadcast %17 : vector<1x1xf32> to vector<1x8xf32>
    %19 = arith.divf %15, %18 : vector<1x8xf32>
    %c0_10 = arith.constant 0 : index
    %c0_11 = arith.constant 0 : index
    %20 = vector.load %arg5[%c0_10, %c0_11] : memref<1x8xf32, #tpu.memory_space<vmem>>, vector<1x8xf32>
    tpu.vector_store %arg5[%c0_10, %c0_11], %19 {strides = array<i32>} : memref<1x8xf32, #tpu.memory_space<vmem>>, vector<1x8xf32>,
    return
  }
  func.func @transform_0(%arg0: i32) -> (i32, i32) {
    %c0_i32 = arith.constant 0 : i32
    %c0_i32_0 = arith.constant 0 : i32
    %c0_i32_1 = arith.constant 0 : i32
    return %c0_i32, %c0_i32_0 : i32, i32
  }
  func.func @transform_1(%arg0: i32) -> (i32, i32) {
    %c0_i32 = arith.constant 0 : i32
    %c0_i32_0 = arith.constant 0 : i32
    %c0_i32_1 = arith.constant 0 : i32
    return %c0_i32, %c0_i32_0 : i32, i32
  }
  func.func @transform_2(%arg0: i32) -> (i32, i32) {
    %c0_i32 = arith.constant 0 : i32
    %c0_i32_0 = arith.constant 0 : i32
    %c0_i32_1 = arith.constant 0 : i32
    return %c0_i32, %c0_i32_0 : i32, i32
  }
  func.func @transform_3(%arg0: i32) -> (i32, i32) {
    %c0_i32 = arith.constant 0 : i32
    %c0_i32_0 = arith.constant 0 : i32
    %c0_i32_1 = arith.constant 0 : i32
    return %c0_i32, %c0_i32_0 : i32, i32
  }
  func.func @transform_4(%arg0: i32) -> (i32, i32) {
    %c0_i32 = arith.constant 0 : i32
    %c0_i32_0 = arith.constant 0 : i32
    %c0_i32_1 = arith.constant 0 : i32
    return %c0_i32, %c0_i32_0 : i32, i32
  }
}

</mosaic_0001>

<bundles_post_ra>
// kernel: tpu_custom_call.1
= control target key start
LH: loop header
LB: loop body
LE: loop exit
PB: predicated region body
PF: predicated region fallthrough
CT: control target
= control target key end

     0   :  { %vm50_vm0 = vcmask 261120   ;;  %v287_v7 = vmov 0   ;;  %s384_s0 = inlined_call_operand.vmem [shape: f32[32,8], index: 0, kind: input, shape index: {}]   ;;  %s385_s1 = inlined_call_operand.vmem [shape: f32[32,32], index: 1, kind: input, shape index: {}]   ;;  %s386_s2 = inlined_call_operand.vmem [shape: f32[32,1], index: 2, kind: input, shape index: {}]   ;;  %s387_s3 = inlined_call_operand.vmem [shape: f32[32,1], index: 3, kind: input, shape index: {}]   ;;  %s388_s4 = inlined_call_operand.hbm [shape: f32[1,8], index: 4, kind: output, shape index: {}]  }
   0x1   :  { %v22_v0 = vld [vmem:[%s384_s0] sm:$0xff]  ;;  %v23_v1 = vld [vmem:[%s384_s0 + $0x8] sm:$0xff]  ;;  %v24_v2 = vld [vmem:[%s384_s0 + $0x10] sm:$0xff]  ;;  %257 = vset.pattern.permute.xlu0 %v287_v7  ;;  %258 = vset.pattern.permute.xlu1 %v287_v7 }
   0x2   :  { %v243_v3 = vpack.c.bf16 %v23_v1, %v22_v0  ;;  %v25_v4 = vld [vmem:[%s384_s0 + $0x18] sm:$0xff]  ;;  %v18_v5 = vld [vmem:[%s385_s1] sm:$0xff]  ;;  %v20_v6 = vld [vmem:[%s385_s1 + $0x10] sm:$0xff] }
   0x3   :  { %v247_v8 = vpack.c.bf16 %v25_v4, %v24_v2  ;;  %237 = vmatprep.mubr.msk.f32.mxu0 %vm50_vm0, %v18_v5  ;;  %240 = vmatprep.mubr.msk.f32.mxu1 %vm50_vm0, %v20_v6  ;;  %v26_v9 = vld [vmem:[%s386_s2] sm:$0xff]  ;;  %v28_v10 = vld [vmem:[%s386_s2 + $0x10] sm:$0xff] }
   0x4   :  { %244 = vmatprep.subr.bf16.mxu0 %v243_v3  ;;  %251 = vmatprep.subr.bf16.mxu1 %v243_v3 }
   0x5   :  { %246 = vmatpush3.bf16.msra.mxu0 %v243_v3  ;;  %253 = vmatpush3.bf16.msra.mxu1 %v243_v3 }
   0x6   :  { %248 = vmatprep.subr.bf16.mxu0 %v247_v8  ;;  %252 = vmatprep.subr.bf16.mxu1 %v247_v8 }
   0x7   :  { %9 = vsyncpa [#allocation3], 0  ;;  %32 = vperm.xlu0 %257, %v26_v9   ;;  %42 = vperm.xlu1 %258, %v28_v10   ;;  %v27_v11 = vld [vmem:[%s386_s2 + $0x8] sm:$0xff]  ;;  %v148_v12 = vld [vmem:[%s387_s3] sm:$0xff]  ;;  %vm176_vm1 = vcmask 64512   ;;  %vm201_vm2 = vcmask 57344  }
   0x8   :  { %v19_v13 = vld [vmem:[%s385_s1 + $0x8] sm:$0xff]  ;;  %v21_v14 = vld [vmem:[%s385_s1 + $0x18] sm:$0xff]  ;;  %v150_v17 = vld [vmem:[%s387_s3 + $0x10] sm:$0xff] }
   0x9   :  { %250 = vmatpush3.bf16.msra.mxu0 %v247_v8  ;;  %254 = vmatpush3.bf16.msra.mxu1 %v247_v8  ;;  %v149_v15 = vld [vmem:[%s387_s3 + $0x8] sm:$0xff]  ;;  %v29_v16 = vld [vmem:[%s386_s2 + $0x18] sm:$0xff]  ;;  %s288_s2 = smov [#allocation2]  }
   0xa   :  { %v151_v18 = vld [vmem:[%s387_s3 + $0x18] sm:$0xff]  ;;  %s209_s3 = sshll.u32 %s288_s2, 4  ;;  %s210_s3 = int_to_ptr.vmem [resolvable:$true] %s209_s3 }
   0xb   :  { %37 = vperm.xlu0 %257, %v27_v11   ;;  %154 = vperm.xlu1 %258, %v148_v12   ;;  %s263_s19 = scalar_lea.vmem %s210_s3, 16  ;;  %s267_s20 = scalar_lea.vmem %s210_s3, 32 }
   0xc   :  { %238 = vmatmul.mubr.msk.f32.vlgmr.msra.gmra.mrb[0].mxu0 %vm50_vm0, %v19_v13  ;;  %241 = vmatmul.mubr.msk.f32.vlgmr.msra.gmra.mrb[0].mxu1 %vm50_vm0, %v21_v14  ;;  %p264_p0 = scmp.ne.s32.totalorder %s210_s3, %s263_s19  ;;  %p268_p1 = scmp.lt.s32.totalorder %s210_s3, %s210_s3 }
   0xd   :  { %p269_p2 = scmp.lt.s32.totalorder %s267_s20, %s263_s19 }
   0xf   :  { %159 = vperm.xlu0 %257, %v149_v15   ;;  %47 = vperm.xlu1 %258, %v29_v16   ;;  %p270_p3 = por %p269_p2, %p268_p1 }
  0x11   :  { %p271_p4 = pnand %p270_p3, %p264_p0 }
  0x13   :  { %164 = vperm.xlu0 %257, %v150_v17   ;;  %169 = vperm.xlu1 %258, %v151_v18  }
  0x86   :  { %v33_v19 = vpop.permute.xlu0 %32  ;;  %v43_v20 = vpop.permute.xlu1 %42 }
  0x8a   :  { %v38_v21 = vpop.permute.xlu0 %37  ;;  %v155_v22 = vpop.permute.xlu1 %154 }
  0x8e   :  { %v160_v23 = vpop.permute.xlu0 %159  ;;  %v48_v24 = vpop.permute.xlu1 %47 }
  0x92   :  { %v165_v33 = vpop.permute.xlu0 %164  ;;  %v170_v37 = vpop.permute.xlu1 %169 }
  0xdf   :  { %v239_v25 = vpop.f32.mrb[0].mxu0  ;;  %v242_v26 = vpop.f32.mrb[0].mxu1 }
  0xe0   :  { %v135_v27 = vadd.f32 %v239_v25, %v38_v21  ;;  %v129_v28 = vpop.f32.mrb[1].mxu0  ;;  %v139_v29 = vpop.f32.mrb[1].mxu1  ;;  %v145_v30 = vadd.f32 %v242_v26, %v48_v24 }
  0xe1   :  { %v130_v31 = vadd.f32 %v129_v28, %v33_v19  ;;  %v140_v32 = vadd.f32 %v139_v29, %v43_v20 }
  0xe2   :  { %v173_v34 = vmul.f32 %v160_v23, %v135_v27  ;;  %v175_v39 = vmul.f32 %v170_v37, %v145_v30 }
  0xe3   :  { %v172_v35 = vmul.f32 %v155_v22, %v130_v31  ;;  %v174_v36 = vmul.f32 %v165_v33, %v140_v32 }
  0xe4   :  { %v178_v38 = vsel %vm176_vm1, %v173_v34, 0.0  ;;  %v182_v44 = vsel %vm176_vm1, %v175_v39, 0.0 }
  0xe5   :  { %v177_v40 = vsel %vm176_vm1, %v172_v35, 0.0  ;;  %v180_v42 = vsel %vm176_vm1, %v174_v36, 0.0 }
  0xe6   :  { %v179_v41 = vadd.f32 %v178_v38, %v177_v40 }
  0xe8   :  { %v181_v43 = vadd.f32 %v180_v42, %v179_v41 }
  0xea   :  { %v183_v45 = vadd.f32 %v182_v44, %v181_v43 }
  0xec   :  { %v184_v46 = vrot.slane %v183_v45, 4 }
  0xee   :  { %v185_v47 = vadd.f32 %v184_v46, %v183_v45 }
  0xf0   :  { %v186_v48 = vrot.slane %v185_v47, 2 }
  0xf2   :  { %v187_v49 = vadd.f32 %v186_v48, %v185_v47 }
  0xf4   :  { %v188_v50 = vrot.slane %v187_v49, 1 }
  0xf6   :  { %v189_v51 = vadd.f32 %v188_v50, %v187_v49 }
  0xf8   :  { %v190_v52 = vsel %vm176_vm1, %v189_v51, -inf }
  0xf9   :  { %191 = vmax.xlane.f32.xlu0 %v190_v52 }
 0x186   :  { %v192_v53 = vpop.xlane.xlu0 %191 }
 0x187   :  { %v193_v54 = vsub.f32 %v189_v51, %v192_v53 }
 0x189   :  { %v194_v55 = vmul.f32 1.442695, %v193_v54 }
 0x18b   :  { %259 = vpow2.f32 %v194_v55 }
 0x195   :  { %v260_v56 = vpop.eup %259 }
 0x196   :  { %v196_v57 = vsel %vm176_vm1, %v260_v56, 0.0 }
 0x197   :  { %197 = vadd.xlane.f32.xlu1 %v196_v57 }
 0x224   :  { %v198_v58 = vpop.xlane.xlu1 %197 }
 0x225   :  { %261 = vrcp.f32 %v198_v58 }
 0x22f   :  { %v262_v59 = vpop.eup %261 }
 0x230   :  { %v200_v60 = vmul.f32 %v262_v59, %v260_v56 }
 0x232   :  { %202 = vst.msk [vmem:[#allocation2] sm:$0x1] %vm201_vm2, %v200_v60 }
 0x233   :  { %274 = shalt.err (!%p271_p4)
}
 0x234   :  { %s275_s23 = scalar_lea.hbm %s388_s4, 16 }
 0x235   :  { %p276_p5 = scmp.ne.s32.totalorder %s388_s4, %s275_s23  ;;  %p279_p6 = scmp.lt.u32.totalorder %s275_s23, %s388_s4 }
 0x237   :  { %p281_p7 = pnand %p279_p6, %p276_p5 }
 0x239   :  { %284 = shalt.err (!%p281_p7)
}
 0x23a   :  { %212 = dma.vmem_to_hbm [thread:$0]  %s210_s3, 16, %s388_s4, [#allocation3]  }
 0x23b   :  { %285 = dma.done.wait [#allocation3], 16  }
 0x23c   :  { %286 = vsyncadd [#allocation3], 4294967280 }
 0x23d   :  { %216 = vsyncpa [#allocation3], 1 }

</bundles_post_ra>
